<compile_context>
chip_gen: v6e
topology: v6e:2x2x1
jax: 0.10.0
libtpu: 0.0.40
codegen_flags: <defaults>
</compile_context>

<pallas_src>
import jax
import jax.numpy as jnp
import numpy as np
from jax.experimental import pallas as pl
from jax.experimental.pallas import tpu as pltpu

_ROW_TILE_CAP = 128  # 128 rows fill v5e's MXU; raise to 256 on v6e/v7x if the
                     # (row_tile * S * H) gather intermediate fits the VMEM budget.


def _round_up(x, m):
    return (x + m - 1) // m * m


# ----------------------------- Pallas kernels -------------------------------
def _towers_gather_kernel(tsel_ref, ids_ref, mask_ref, emb_ref, w_ref, b_ref, out_ref):
    """One grid step = one row tile; every row in the tile belongs to ONE tower.

    tsel_ref : [T]       int32  per-tile tower id (scalar prefetch; used by index_maps only)
    ids_ref  : [R, S]    int32  token ids (valid row indices into this tower's table)
    mask_ref : [R, S]    f32    attention mask (1.0 = real token)
    emb_ref  : [1, V, H] bf16   this tile's tower embedding table
    w_ref    : [1, H, D] bf16   this tile's tower projection weight
    b_ref    : [1, 1, D] f32    this tile's tower projection bias
    out_ref  : [R, D]    f32
    """
    del tsel_ref
    ids = ids_ref[...]                                   # [R, S]
    mask = mask_ref[...]                                 # [R, S] f32
    emb = emb_ref[0]                                     # [V, H] bf16
    R, S = ids.shape
    H = emb.shape[-1]

    # Real row gather from the VMEM-resident table (no O(vocab) one-hot work).
    gathered = jnp.take(emb, ids.reshape(-1), axis=0, mode="clip")    # [R*S, H] bf16
    gathered = gathered.reshape(R, S, H).astype(jnp.float32)

    # Mask-weighted sum pooling (VPU) + exact mean (review correctness item).
    pooled_sum = jnp.sum(gathered * mask[:, :, None], axis=1)         # [R, H]
    denom = jnp.maximum(jnp.sum(mask, axis=1, keepdims=True), 1.0)    # [R, 1]
    pooled = pooled_sum / denom

    # Single-tower projection on the MXU in bf16 with f32 accumulation.
    proj = jnp.dot(pooled.astype(jnp.bfloat16), w_ref[0],
                   preferred_element_type=jnp.float32) + b_ref[0]     # [R, D]
    out_ref[...] = jnp.tanh(proj)
    # NOTE: padded rows (mask all zero) produce tanh(b) and are sliced off by the caller.


def _towers_onehot_kernel(tsel_ref, ids_ref, mask_ref, emb_ref, w_ref, b_ref, out_ref):
    """Compatibility fallback (identical semantics) for Mosaic builds that lack an
    in-kernel gather lowering.  Only used if the gather kernel fails to compile."""
    del tsel_ref
    ids = ids_ref[...]
    mask = mask_ref[...]
    R, S = ids.shape
    V = emb_ref.shape[1]

    vocab_iota = jax.lax.broadcasted_iota(jnp.int32, (R, S, V), 2)
    onehot = (ids[:, :, None] == vocab_iota).astype(jnp.float32)
    token_w = jnp.sum(onehot * mask[:, :, None], axis=1)              # [R, V]
    pooled_sum = jnp.dot(token_w.astype(jnp.bfloat16), emb_ref[0],
                         preferred_element_type=jnp.float32)          # [R, H]
    denom = jnp.maximum(jnp.sum(mask, axis=1, keepdims=True), 1.0)
    pooled = pooled_sum / denom
    proj = jnp.dot(pooled.astype(jnp.bfloat16), w_ref[0],
                   preferred_element_type=jnp.float32) + b_ref[0]
    out_ref[...] = jnp.tanh(proj)


# ------------------------------ pallas_call ---------------------------------
def _build_towers_call(kernel_fn, *, num_tiles, row_tile, seq_len, vocab, hidden,
                       out_dim, single_buffer_weights):
    weight_kwargs = {}
    if single_buffer_weights:
        # The weight block index changes exactly once (question -> paragraph tiles);
        # one VMEM buffer suffices and halves the resident weight footprint.
        weight_kwargs = dict(pipeline_mode=pl.Buffered(1))

    def row_map(i, tsel):
        return (i, 0)

    def tower_map(i, tsel):          # per-tile tower id selects the weight half
        return (tsel[i], 0, 0)

    grid_spec = pltpu.PrefetchScalarGridSpec(
        num_scalar_prefetch=1,
        grid=(num_tiles,),
        in_specs=[
            pl.BlockSpec((row_tile, seq_len), row_map),                      # token ids
            # TODO(synk): for prefix-only masks, ship per-row lengths in SMEM instead
            # of a dense f32 mask to halve the ragged-input DMA bytes.
            pl.BlockSpec((row_tile, seq_len), row_map),                      # attention mask
            pl.BlockSpec((1, vocab, hidden), tower_map, **weight_kwargs),    # emb table half
            pl.BlockSpec((1, hidden, out_dim), tower_map, **weight_kwargs),  # proj W half
            pl.BlockSpec((1, 1, out_dim), tower_map, **weight_kwargs),       # proj b half
        ],
        out_specs=pl.BlockSpec((row_tile, out_dim), row_map),                # lane-dense D
    )
    return pl.pallas_call(
        kernel_fn,
        out_shape=jax.ShapeDtypeStruct((num_tiles * row_tile, out_dim), jnp.float32),
        grid_spec=grid_spec,
        compiler_params=pltpu.CompilerParams(
            # Row tiles are independent -> shardable across v7x's two TensorCores.
            dimension_semantics=("parallel",),
            # Explicit budget; v7x has only 64 MiB physical VMEM (32 MiB default scoped).
            vmem_limit_bytes=32 * 1024 * 1024,
        ),
    )


_GATHER_SUPPORTED = None  # resolved lazily on the first kernel invocation


def _run_fused_towers(tower_sel, ids, mask, emb_t, w_t, b_t, *, row_tile):
    global _GATHER_SUPPORTED
    num_tiles = ids.shape[0] // row_tile
    common = dict(num_tiles=num_tiles, row_tile=row_tile, seq_len=ids.shape[1],
                  vocab=emb_t.shape[1], hidden=emb_t.shape[2], out_dim=w_t.shape[2])
    args = (tower_sel, ids, mask, emb_t, w_t, b_t)

    if _GATHER_SUPPORTED is not False:
        try:
            out = _build_towers_call(_towers_gather_kernel,
                                     single_buffer_weights=True, **common)(*args)
            jax.block_until_ready(out)
            _GATHER_SUPPORTED = True
            return out
        except Exception:
            # TODO(synk): on Mosaic builds without a gather lowering, the production
            # path for large vocabularies is a scalar-prefetch DMA row gather against
            # an HBM-resident table; here we fall back to the one-hot kernel.
            _GATHER_SUPPORTED = False
    return _build_towers_call(_towers_onehot_kernel,
                              single_buffer_weights=False, **common)(*args)


# ------------------------- Two-tower similarity model -----------------------
class TwoTowerSimilarityModelPallas:
    def __init__(self, vocab_size, hidden_dim, out_dim, key):
        kq_e, kq_w, kq_b, kp_e, kp_w, kp_b = jax.random.split(key, 6)
        s = 0.02
        self.vocab_size = vocab_size
        # f32 master parameters (used by the pure-JAX reference).
        self.q_emb = s * jax.random.normal(kq_e, (vocab_size, hidden_dim), jnp.float32)
        self.q_w = s * jax.random.normal(kq_w, (hidden_dim, out_dim), jnp.float32)
        self.q_b = s * jax.random.normal(kq_b, (1, out_dim), jnp.float32)
        self.p_emb = s * jax.random.normal(kp_e, (vocab_size, hidden_dim), jnp.float32)
        self.p_w = s * jax.random.normal(kp_w, (hidden_dim, out_dim), jnp.float32)
        self.p_b = s * jax.random.normal(kp_b, (1, out_dim), jnp.float32)
        # Fused kernel parameters: per-tower stacked; bf16 for the MXU fast path and
        # to halve the VMEM-resident weight footprint.  Bias stays f32.
        self.emb_towers = jnp.stack([self.q_emb, self.p_emb]).astype(jnp.bfloat16)  # [2, V, H]
        self.w_towers = jnp.stack([self.q_w, self.p_w]).astype(jnp.bfloat16)        # [2, H, D]
        self.b_towers = jnp.stack([self.q_b, self.p_b]).astype(jnp.float32)         # [2, 1, D]

    def forward(self, question_input_ids, question_attention_mask,
                paragraph_input_ids_list, paragraph_attention_mask_list):
        B, S = question_input_ids.shape
        P = len(paragraph_input_ids_list)

        q_ids = question_input_ids.astype(jnp.int32)
        q_mask = question_attention_mask.astype(jnp.float32)
        p_ids = jnp.concatenate([p.astype(jnp.int32) for p in paragraph_input_ids_list], axis=0)
        p_mask = jnp.concatenate([m.astype(jnp.float32)
                                  for m in paragraph_attention_mask_list], axis=0)

        # Row tile: cap of 128 (256 on v6e/v7x); clamp for tiny demo batches, keep x8.
        row_tile = min(_ROW_TILE_CAP, _round_up(max(B, P * B), 8))
        # Pad the question and paragraph sections independently so every tile is
        # single-tower (tower routing hoisted out of the kernel hot path).
        q_rows = _round_up(B, row_tile)
        p_rows = _round_up(P * B, row_tile)

        def pad_rows(x, n):
            return jnp.pad(x, ((0, n - x.shape[0]), (0, 0)))

        ids = jnp.concatenate([pad_rows(q_ids, q_rows), pad_rows(p_ids, p_rows)], axis=0)
        mask = jnp.concatenate([pad_rows(q_mask, q_rows), pad_rows(p_mask, p_rows)], axis=0)

        num_q_tiles = q_rows // row_tile
        num_p_tiles = p_rows // row_tile
        tower_sel = jnp.array([0] * num_q_tiles + [1] * num_p_tiles, dtype=jnp.int32)

        out = _run_fused_towers(tower_sel, ids, mask,
                                self.emb_towers, self.w_towers, self.b_towers,
                                row_tile=row_tile)

        question_embedding = out[:B]
        paragraph_embeddings = [out[q_rows + i * B: q_rows + (i + 1) * B] for i in range(P)]
        # NOTE: the reference module defines nn.CosineSimilarity but never applies it
        # in forward(); we faithfully return the raw embeddings.
        return question_embedding, paragraph_embeddings

    # Pure-JAX reference (same math, un-fused, f32) for correctness checking.
    def reference_forward(self, q_ids, q_mask, p_ids_list, p_mask_list):
        def tower(ids, mask, table, w, b):
            e = jnp.take(table, ids, axis=0)                        # [B, S, H]
            m = mask.astype(jnp.float32)
            summed = jnp.einsum('bs,bsh->bh', m, e)
            denom = jnp.maximum(jnp.sum(m, axis=1, keepdims=True), 1.0)
            return jnp.tanh((summed / denom) @ w + b)

        q = tower(q_ids, q_mask, self.q_emb, self.q_w, self.q_b)
        ps = [tower(i, m, self.p_emb, self.p_w, self.p_b)
              for i, m in zip(p_ids_list, p_mask_list)]
        return q, ps


# ----------------------------------- main -----------------------------------
if __name__ == "__main__":
    B, S, V, H, D = 2, 8, 128, 128, 128   # lane-friendly V/H/D; lane-dense output
    P = 3                                  # number of paragraphs in the list

    key = jax.random.PRNGKey(0)
    k_model, k_qid, k_pid = jax.random.split(key, 3)

    model = TwoTowerSimilarityModelPallas(V, H, D, k_model)

    question_input_ids = jax.random.randint(k_qid, (B, S), 0, V, dtype=jnp.int32)
    q_lens = jnp.array([S, S - 3], jnp.int32)
    question_attention_mask = (jnp.arange(S)[None, :] < q_lens[:, None]).astype(jnp.float32)

    paragraph_input_ids_list = []
    paragraph_attention_mask_list = []
    pid_keys = jax.random.split(k_pid, P)
    for i in range(P):
        pids = jax.random.randint(pid_keys[i], (B, S), 0, V, dtype=jnp.int32)
        p_lens = jnp.array([S - (i % 2), S - 2], jnp.int32)
        pmask = (jnp.arange(S)[None, :] < p_lens[:, None]).astype(jnp.float32)
        paragraph_input_ids_list.append(pids)
        paragraph_attention_mask_list.append(pmask)

    q_emb, p_embs = model.forward(question_input_ids, question_attention_mask,
                                  paragraph_input_ids_list,
                                  paragraph_attention_mask_list)
    jax.block_until_ready(q_emb)
    for pe in p_embs:
        jax.block_until_ready(pe)

    assert q_emb.shape == (B, D)
    assert len(p_embs) == P and all(pe.shape == (B, D) for pe in p_embs)

    # Numerical check against the un-fused pure-JAX f32 reference
    # (kernel uses bf16 tables/weights -> loose-ish tolerance).
    q_ref, p_refs = model.reference_forward(question_input_ids, question_attention_mask,
                                            paragraph_input_ids_list,
                                            paragraph_attention_mask_list)
    np.testing.assert_allclose(np.asarray(q_emb), np.asarray(q_ref),
                               rtol=2e-2, atol=2e-3)
    for pe, pr in zip(p_embs, p_refs):
        np.testing.assert_allclose(np.asarray(pe), np.asarray(pr),
                                   rtol=2e-2, atol=2e-3)

    print("KERNEL_OK")
</pallas_src>

<mosaic_0001>
module attributes {stable_mosaic.version = 11 : i64} {
  func.func @_towers_onehot_kernel(%arg0: i32, %arg1: memref<2xi32, #tpu.memory_space<smem>>, %arg2: memref<8x8xi32, #tpu.memory_space<vmem>>, %arg3: memref<8x8xf32, #tpu.memory_space<vmem>>, %arg4: memref<1x128x128xbf16, #tpu.memory_space<vmem>>, %arg5: memref<1x128x128xbf16, #tpu.memory_space<vmem>>, %arg6: memref<1x1x128xf32, #tpu.memory_space<vmem>>, %arg7: memref<8x128xf32, #tpu.memory_space<vmem>>) attributes {dimension_semantics = [#tpu.dimension_semantics<parallel>], iteration_bounds = array<i64: 2>, scalar_prefetch = 1 : i64, scratch_operands = 0 : i64, tpu.core_type = #tpu.core_type<tc>, window_params = [{transform_indices = @transform_0, window_bounds = array<i64: 8, 8>}, {transform_indices = @transform_1, window_bounds = array<i64: 8, 8>}, {transform_indices = @transform_2, window_bounds = array<i64: 1, 128, 128>}, {transform_indices = @transform_3, window_bounds = array<i64: 1, 128, 128>}, {transform_indices = @transform_4, window_bounds = array<i64: 1, 1, 128>}, {transform_indices = @transform_5, window_bounds = array<i64: 8, 128>}]} {
    %c0 = arith.constant 0 : index
    %c0_0 = arith.constant 0 : index
    %0 = vector.load %arg2[%c0, %c0_0] : memref<8x8xi32, #tpu.memory_space<vmem>>, vector<8x8xi32>
    %c0_1 = arith.constant 0 : index
    %c0_2 = arith.constant 0 : index
    %1 = vector.load %arg3[%c0_1, %c0_2] : memref<8x8xf32, #tpu.memory_space<vmem>>, vector<8x8xf32>
    %2 = tpu.iota {dimensions = array<i32: 2>} : vector<8x8x128xi32>
    %3 = vector.shape_cast %0 : vector<8x8xi32> to vector<8x8x1xi32>
    %4 = vector.broadcast %3 : vector<8x8x1xi32> to vector<8x8x128xi32>
    %5 = arith.cmpi eq, %4, %2 : vector<8x8x128xi32>
    %6 = arith.extui %5 : vector<8x8x128xi1> to vector<8x8x128xi32>
    %7 = arith.sitofp %6 : vector<8x8x128xi32> to vector<8x8x128xf32>
    %8 = vector.shape_cast %1 : vector<8x8xf32> to vector<8x8x1xf32>
    %9 = vector.broadcast %8 : vector<8x8x1xf32> to vector<8x8x128xf32>
    %10 = arith.mulf %7, %9 : vector<8x8x128xf32>
    %cst = arith.constant dense<0.000000e+00> : vector<8x128xf32>
    %11 = vector.multi_reduction <add>, %10, %cst [1] : vector<8x8x128xf32> to vector<8x128xf32>
    %12 = arith.truncf %11 : vector<8x128xf32> to vector<8x128xbf16>
    %c0_3 = arith.constant 0 : index
    %c0_4 = arith.constant 0 : index
    %c0_5 = arith.constant 0 : index
    %13 = vector.load %arg4[%c0_3, %c0_4, %c0_5] : memref<1x128x128xbf16, #tpu.memory_space<vmem>>, vector<1x128x128xbf16>
    %14 = vector.shape_cast %13 : vector<1x128x128xbf16> to vector<128x128xbf16>
    %cst_6 = arith.constant dense<0.000000e+00> : vector<8x128xf32>
    %15 = tpu.matmul %12, %14, %cst_6 {dimension_numbers = #tpu.dot_dimension_numbers<[1], [0], [0], [1], [0, 0, 1, 1], [], []>} : vector<8x128xbf16>, vector<128x128xbf16>, vector<8x128xf32> -> vector<8x128xf32>
    %cst_7 = arith.constant dense<0.000000e+00> : vector<8xf32>
    %16 = vector.multi_reduction <add>, %1, %cst_7 [1] : vector<8x8xf32> to vector<8xf32>
    %17 = vector.shape_cast %16 : vector<8xf32> to vector<8x1xf32>
    %cst_8 = arith.constant 1.000000e+00 : f32
    %18 = vector.broadcast %cst_8 : f32 to vector<8x1xf32>
    %19 = arith.maximumf %17, %18 : vector<8x1xf32>
    %20 = vector.broadcast %19 : vector<8x1xf32> to vector<8x128xf32>
    %21 = arith.divf %15, %20 : vector<8x128xf32>
    %22 = arith.truncf %21 : vector<8x128xf32> to vector<8x128xbf16>
    %c0_9 = arith.constant 0 : index
    %c0_10 = arith.constant 0 : index
    %c0_11 = arith.constant 0 : index
    %23 = vector.load %arg5[%c0_9, %c0_10, %c0_11] : memref<1x128x128xbf16, #tpu.memory_space<vmem>>, vector<1x128x128xbf16>
    %24 = vector.shape_cast %23 : vector<1x128x128xbf16> to vector<128x128xbf16>
    %cst_12 = arith.constant dense<0.000000e+00> : vector<8x128xf32>
    %25 = tpu.matmul %22, %24, %cst_12 {dimension_numbers = #tpu.dot_dimension_numbers<[1], [0], [0], [1], [0, 0, 1, 1], [], []>} : vector<8x128xbf16>, vector<128x128xbf16>, vector<8x128xf32> -> vector<8x128xf32>
    %c0_13 = arith.constant 0 : index
    %c0_14 = arith.constant 0 : index
    %c0_15 = arith.constant 0 : index
    %26 = vector.load %arg6[%c0_13, %c0_14, %c0_15] : memref<1x1x128xf32, #tpu.memory_space<vmem>>, vector<1x1x128xf32>
    %27 = vector.shape_cast %26 : vector<1x1x128xf32> to vector<1x128xf32>
    %28 = vector.broadcast %27 : vector<1x128xf32> to vector<8x128xf32>
    %29 = arith.addf %25, %28 : vector<8x128xf32>
    %30 = math.tanh %29 : vector<8x128xf32>
    %c0_16 = arith.constant 0 : index
    %c0_17 = arith.constant 0 : index
    %31 = vector.load %arg7[%c0_16, %c0_17] : memref<8x128xf32, #tpu.memory_space<vmem>>, vector<8x128xf32>
    tpu.vector_store %arg7[%c0_16, %c0_17], %30 {strides = array<i32>} : memref<8x128xf32, #tpu.memory_space<vmem>>, vector<8x128xf32>,
    return
  }
  func.func @transform_0(%arg0: i32, %arg1: memref<2xi32, #tpu.memory_space<smem>>) -> (i32, i32) {
    %c0_i32 = arith.constant 0 : i32
    %c0_i32_0 = arith.constant 0 : i32
    return %arg0, %c0_i32 : i32, i32
  }
  func.func @transform_1(%arg0: i32, %arg1: memref<2xi32, #tpu.memory_space<smem>>) -> (i32, i32) {
    %c0_i32 = arith.constant 0 : i32
    %c0_i32_0 = arith.constant 0 : i32
    return %arg0, %c0_i32 : i32, i32
  }
  func.func @transform_2(%arg0: i32, %arg1: memref<2xi32, #tpu.memory_space<smem>>) -> (i32, i32, i32) {
    %0 = arith.index_cast %arg0 : i32 to index
    %1 = memref.load %arg1[%0] : memref<2xi32, #tpu.memory_space<smem>>
    %c0_i32 = arith.constant 0 : i32
    %c0_i32_0 = arith.constant 0 : i32
    %c0_i32_1 = arith.constant 0 : i32
    return %1, %c0_i32, %c0_i32_0 : i32, i32, i32
  }
  func.func @transform_3(%arg0: i32, %arg1: memref<2xi32, #tpu.memory_space<smem>>) -> (i32, i32, i32) {
    %0 = arith.index_cast %arg0 : i32 to index
    %1 = memref.load %arg1[%0] : memref<2xi32, #tpu.memory_space<smem>>
    %c0_i32 = arith.constant 0 : i32
    %c0_i32_0 = arith.constant 0 : i32
    %c0_i32_1 = arith.constant 0 : i32
    return %1, %c0_i32, %c0_i32_0 : i32, i32, i32
  }
  func.func @transform_4(%arg0: i32, %arg1: memref<2xi32, #tpu.memory_space<smem>>) -> (i32, i32, i32) {
    %0 = arith.index_cast %arg0 : i32 to index
    %1 = memref.load %arg1[%0] : memref<2xi32, #tpu.memory_space<smem>>
    %c0_i32 = arith.constant 0 : i32
    %c0_i32_0 = arith.constant 0 : i32
    %c0_i32_1 = arith.constant 0 : i32
    return %1, %c0_i32, %c0_i32_0 : i32, i32, i32
  }
  func.func @transform_5(%arg0: i32, %arg1: memref<2xi32, #tpu.memory_space<smem>>) -> (i32, i32) {
    %c0_i32 = arith.constant 0 : i32
    %c0_i32_0 = arith.constant 0 : i32
    return %arg0, %c0_i32 : i32, i32
  }
}

</mosaic_0001>

<bundles_post_ra>
// kernel: tpu_custom_call.1
= control target key start
LH: loop header
LB: loop body
LE: loop exit
PB: predicated region body
PF: predicated region fallthrough
CT: control target
= control target key end

     0   :  { %s1785_s0 = inlined_call_operand.vmem [shape: s32[2], index: 0, kind: input, shape index: {}]   ;;  %s1786_s1 = inlined_call_operand.vmem [shape: s32[16,8], index: 1, kind: input, shape index: {}]   ;;  %s1787_s2 = inlined_call_operand.vmem [shape: f32[16,8], index: 2, kind: input, shape index: {}]   ;;  %s1788_s3 = inlined_call_operand.hbm [shape: bf16[2,128,128], index: 3, kind: input, shape index: {}]   ;;  %s1789_s4 = inlined_call_operand.hbm [shape: bf16[2,128,128], index: 4, kind: input, shape index: {}]   ;;  %s1790_s5 = inlined_call_operand.vmem [shape: f32[2,1,128], index: 5, kind: input, shape index: {}]   ;;  %s1791_s6 = inlined_call_operand.hbm [shape: f32[16,128], index: 6, kind: output, shape index: {}]  }
   0x1   :  { %1804 = sst [smem:[#allocation24_spill]] %s1788_s3  ;;  %s11_s23 = sshll.u32 %s1785_s0, 4  ;;  %s12_s23 = int_to_ptr.vmem [resolvable:$true] %s11_s23 }
   0x2   :  { %s1191_s24 = scalar_lea.vmem %s12_s23, 16  ;;  %p1196_p1 = scmp.lt.s32.totalorder %s12_s23, %s12_s23 }
   0x3   :  { %p1192_p0 = scmp.ne.s32.totalorder %s12_s23, %s1191_s24  ;;  %p1197_p2 = scmp.lt.s32.totalorder %s1191_s24, %s1191_s24 }
   0x5   :  { %p1198_p3 = por %p1197_p2, %p1196_p1 }
   0x7   :  { %p1199_p4 = pnand %p1198_p3, %p1192_p0 }
   0x9   :  { %1202 = shalt.err (!%p1199_p4)  }
   0xa   :  { %s1379_s25 = smov [#allocation3]  }
   0xb   :  { %14 = dma.vmem_to_smem %s12_s23, 16, %s1379_s25, [#allocation2] }
   0xc   :  { %1325 = dma.done.wait [#allocation2], 16 }
   0xd   :  { %1326 = vsyncadd [#allocation2], 4294967280 }
   0xe   :  { %16 = sfence }
   0xf   :  { %17 = vsyncpa [#allocation5], 0 }
  0x10   :  { %19 = vsyncpa [#allocation5 + $0x1], 0 }
  0x11   :  { %20 = vsyncpa [#allocation8], 0 }
  0x12   :  { %22 = vsyncpa [#allocation8 + $0x1], 0 }
  0x13   :  { %23 = vsyncpa [#allocation6], 0 }
  0x14   :  { %25 = vsyncpa [#allocation6 + $0x1], 0  ;;  %s1425_s0 = smov 0   ;;  %s1427_s26 = smov 0  }
  0x15   :  { %s1429_s27 = smov 0   ;;  %s1431_s28 = smov 0  }
  0x16   :  { %s1433_s29 = smov 0   ;;  %s1435_s30 = smov 0  }
  0x17   :  { %s1437_s7 = smov 0   ;;  %s1439_s8 = smov 0  }
  0x18   :  { %s1441_s9 = smov 0   ;;  %s1443_s10 = smov 0  }
  0x19 LB: > { %1805 = sst [smem:[#allocation18_spill]] %s1341_s0  ;;  %s1474_s11 = sadd.s32 4294967295, %s1377_s10   ;;  %s1377_s10 = sphi %s1443_s10, %s1848_s10   ;;  %s1373_s9 = sphi %s1441_s9, %s1847_s9   ;;  %s1369_s8 = sphi %s1439_s8, %s1846_s8   ;;  %s1365_s7 = sphi %s1437_s7, %s1845_s7   ;;  %s1361_s30 = sphi %s1435_s30, %s1844_s30   ;;  %s1357_s29 = sphi %s1433_s29, %s1843_s29   ;;  %s1353_s28 = sphi %s1431_s28, %s1842_s28   ;;  %s1349_s27 = sphi %s1429_s27, %s1836_s27   ;;  %s1345_s26 = sphi %s1427_s26, %s1841_s26   ;;  %s1341_s0 = sphi %s1425_s0, %s1840_s0  }
  0x1a   : > { %1806 = sst [smem:[#allocation19_spill]] %s1349_s27  ;;  %s955_s12 = sadd.s32 4294967294, %s1377_s10  }
  0x1b   : > { %1807 = sst [smem:[#allocation20_spill]] %s1373_s9  ;;  %s1478_s13 = sadd.s32 1, %s1377_s10  }
  0x1c   : > { %s87_s14 = sld [smem:[#allocation3 + %s1377_s10]]  ;;  %s92_s16 = sadd.s32 1, %s1373_s9 }
  0x1d   : > { %s88_s15 = sld [smem:[#allocation3 + %s1478_s13]]  ;;  %p99_p5 = scmp.ne.s32.totalorder %s1373_s9, %s1369_s8 }
  0x1e   : > { %p1796_p6 = scmp.eq.s32.totalorder %s1377_s10, 0  ;;  %p105_p7 = scmp.ne.s32.totalorder %s1369_s8, %s1365_s7 }
  0x1f   : > { %p1797_p8 = scmp.eq.s32.totalorder %s1474_s11, 0  ;;  %s171_s18 = ssub.s32 %s1377_s10, %s1478_s13 }
  0x20   : > { %p1490_p9 = por %p1796_p6, %p99_p5  ;;  %p172_p11 = scmp.eq.s32.totalorder %s171_s18, 0 }
  0x21   : > { %p1498_p10 = por %p1797_p8, %p105_p7  ;;  %s174_s20 = sadd.s32 1, %s1349_s27 }
  0x22   : > { %p184_p12 = scmp.ne.s32.totalorder %s1349_s27, %s1345_s26  ;;  %p185_p13 = scmp.eq.s32.totalorder %s1474_s11, 1 }
  0x23   : > { %s1809_s19 = scalar_select %p1498_p10, 1, 0 }
  0x24   : > { %s89_s21 = ssub.s32 %s87_s14, %s88_s15  ;;  %p190_p1 = scmp.ne.s32.totalorder %s1345_s26, %s1341_s0 }
  0x25   : > { %p90_p0 = scmp.eq.s32.totalorder %s89_s21, 0  ;;  %p1514_p2 = por %p185_p13, %p184_p12 }
  0x26   : > { %s1509_s22 = scalar_select %p172_p11, %s1349_s27, %s174_s20  }
  0x27   : > { %s1512_s23 = scalar_select %p90_p0, %s1373_s9, %s92_s16  }
  0x28   : > { %1810 = sst [smem:[#allocation21_spill]] %s1509_s22  ;;  %p191_p3 = scmp.eq.s32.totalorder %s955_s12, 1 }
  0x29   : > { %1811 = sst [smem:[#allocation22_spill]] %s1512_s23  ;;  %p1795_p5 = scmp.lt.s32.totalorder %s1377_s10, 2 }
  0x2a   : > { %s1812_s24 = scalar_select %p1514_p2, 1, 0 }
  0x2b   : > { %p1520_p7 = por %p191_p3, %p190_p1  ;;  %s225_s7 = sand.u32 1, %s1373_s9  }
  0x2c   : > { %s958_s14 = sshll.u32 %s225_s7, 6  ;;  %p1529_p11 = pnand %p1795_p5, %p1490_p9 }
  0x2d   : > { %s1813_s25 = scalar_select %p1520_p7, 1, 0 }
  0x2e   : > { %s1059_s16 = scalar_select %p1490_p9, [#allocation3], [#allocation10] }
  0x2f   : > { %1814 = sst [smem:[#allocation23_spill]] %s1813_s25  ;;  %s229_s18 = scalar_lea.vmem [#allocation4], %s958_s14 }
  0x30   : > { %s1060_s12 = scalar_select %p1490_p9, %s1377_s10, 0 }
  0x31   : > { %s1850_s16 = smov (!%p1795_p5, %s1059_s16), [#allocation12]  ;;  %s237_s20 = sshll.u32 %s229_s18, 4  ;;  %s1542_s20 = int_to_ptr.vmem [resolvable:$true] %s237_s20 }
  0x32   : > { %s1852_s12 = smov (!%p1795_p5, %s1060_s12), 0  ;;  %p964_p12 = scmp.ge.s32.totalorder %s1377_s10, 1 }
  0x33   : > { %s230_s21 = sld [smem:[%s1850_s16 + %s1852_s12]]  ;;  %p275_p13 = scmp.lt.s32.totalorder %s1377_s10, 3 }
  0x34   : > { %s1817_s3 = sld [smem:[#allocation24_spill]]  ;;  %s1558_s16 = scalar_lea.sflag [#allocation5], %s225_s7 }
  0x35   : > { %p1546_p0 = pnand %p964_p12, %p275_p13  ;;  %s1556_s14 = sld [smem:[#allocation3 + %s1377_s10]] }
  0x36   : > { %p1205_p1 = pneg %p1529_p11 }
  0x37   : > { %s1816_s23 = scalar_select %p1546_p0, 1, 0 }
  0x39   : > { %s999_s9 = sshll.u32 %s230_s21, 10 }
  0x3a   : > { %s1553_s27 = scalar_lea.hbm %s1817_s3, %s999_s9  ;;  %s1208_s25 = scalar_lea.hbm %s1817_s3, 2048 }
  0x3b   : > { %s1203_s12 = scalar_lea.hbm %s1553_s27, 1024  ;;  %p1209_p13 = scmp.lt.s32.totalorder %s1553_s27, %s1817_s3 }
  0x3c   : > { %p1204_p9 = scmp.ne.s32.totalorder %s1553_s27, %s1203_s12  ;;  %p1210_p4 = scmp.lt.s32.totalorder %s1208_s25, %s1203_s12 }
  0x3e   : > { %p1206_p3 = pnand %p1205_p1, %p1204_p9  ;;  %p1211_p5 = por %p1210_p4, %p1209_p13 }
  0x40   : > { %p1207_p12 = pneg %p1206_p3 }
  0x42   : > { %p1212_p6 = pnand %p1211_p5, %p1207_p12 }
  0x44   : > { %1215 = shalt.err (!%p1212_p6)
}
  0x45   : > { %s1216_s7 = scalar_lea.vmem %s1542_s20, 1024  ;;  %s1380_s17 = smov [#allocation4]  }
  0x46   : > { %p1217_p8 = scmp.ne.s32.totalorder %s1542_s20, %s1216_s7  ;;  %s1221_s0 = sshll.u32 %s1380_s17, 4  ;;  %s1222_s0 = int_to_ptr.vmem [resolvable:$false] %s1221_s0 }
  0x47   : > { %s1223_s18 = scalar_lea.vmem %s1222_s0, 2048  ;;  %p1224_p3 = scmp.lt.s32.totalorder %s1542_s20, %s1222_s0 }
  0x48   : > { %p1219_p7 = pnand %p1217_p8, %p1205_p1  ;;  %p1225_p2 = scmp.lt.s32.totalorder %s1223_s18, %s1216_s7 }
  0x4a   : > { %p1220_p9 = pneg %p1219_p7  ;;  %p1226_p10 = por %p1225_p2, %p1224_p3 }
  0x4c   : > { %p1227_p0 = pnand %p1226_p10, %p1220_p9 }
  0x4e   : > { %1230 = shalt.err (!%p1227_p0)
}
  0x4f   : > { %s1801_s25 = smov 64   ;;  %s1802_s0 = smov 4  }
  0x50   : > { %1074 = dma.hbm_to_vmem [thread:$0]  (!%p1529_p11), %s1553_s27, 1024, %s1542_s20, %s1558_s16, %s1801_s25, %s1801_s25, %s1802_s0  }
  0x51   : > { %s116_s12 = sld [smem:[#allocation3 + %s1478_s13]]  ;;  %p127_p6 = scmp.ne.s32.totalorder %s1361_s30, %s1357_s29 }
  0x52   : > { %p133_p8 = scmp.ne.s32.totalorder %s1357_s29, %s1353_s28  ;;  %p1818_p10 = scmp.eq.s32.totalorder %s1474_s11, 0 }
  0x53   : > { %s247_s22 = sand.u32 1, %s1361_s30   ;;  %p1820_p4 = scmp.eq.s32.totalorder %s1377_s10, 0 }
  0x54   : > { %p1589_p2 = por %p133_p8, %p1818_p10  ;;  %s120_s9 = sadd.s32 1, %s1361_s30 }
  0x55   : > { %p129_p5 = por %p127_p6, %p1820_p4  ;;  %s961_s15 = sshll.u32 %s247_s22, 6 }
  0x56   : > { %s1819_s21 = scalar_select %p1589_p2, 1, 0 }
  0x57   : > { %s117_s7 = ssub.s32 %s1556_s14, %s116_s12  ;;  %p1821_p0 = scmp.lt.s32.totalorder %s1377_s10, 2 }
  0x58   : > { %p118_p7 = scmp.eq.s32.totalorder %s117_s7, 0  ;;  %s251_s18 = scalar_lea.vmem [#allocation7], %s961_s15 }
  0x59   : > { %p1600_p1 = pnand %p1821_p0, %p129_p5  ;;  %p1823_p11 = pmov %p1821_p0 }
  0x5a   : > { %s1062_s27 = scalar_select %p129_p5, [#allocation3], [#allocation11] }
  0x5b   : > { %s1605_s28 = scalar_select %p118_p7, %s1361_s30, %s120_s9  }
  0x5c   : > { %s1063_s20 = scalar_select %p129_p5, %s1377_s10, 0 }
  0x5d   : > { %s1854_s27 = smov (!%p1823_p11, %s1062_s27), [#allocation13]  ;;  %p1824_p12 = pmov %p1821_p0 }
  0x5e   : > { %s259_s25 = sshll.u32 %s251_s18, 4  ;;  %s1619_s9 = scalar_lea.sflag [#allocation8], %s247_s22  ;;  %s1612_s25 = int_to_ptr.vmem [resolvable:$true] %s259_s25 }
  0x5f   : > { %s1856_s20 = smov (!%p1824_p12, %s1063_s20), 0  ;;  %p1233_p9 = pneg %p1600_p1 }
  0x60   : > { %s252_s16 = sld [smem:[%s1854_s27 + %s1856_s20]]  ;;  %s1236_s20 = scalar_lea.hbm %s1789_s4, 2048 }
  0x66   : > { %s1000_s14 = sshll.u32 %s252_s16, 10 }
  0x67   : > { %s1617_s0 = scalar_lea.hbm %s1789_s4, %s1000_s14 }
  0x68   : > { %s1231_s3 = scalar_lea.hbm %s1617_s0, 1024  ;;  %p1237_p8 = scmp.lt.s32.totalorder %s1617_s0, %s1789_s4 }
  0x69   : > { %p1232_p13 = scmp.ne.s32.totalorder %s1617_s0, %s1231_s3  ;;  %p1238_p10 = scmp.lt.s32.totalorder %s1236_s20, %s1231_s3 }
  0x6b   : > { %p1234_p3 = pnand %p1233_p9, %p1232_p13  ;;  %p1239_p4 = por %p1238_p10, %p1237_p8 }
  0x6d   : > { %p1235_p6 = pneg %p1234_p3 }
  0x6f   : > { %p1240_p5 = pnand %p1239_p4, %p1235_p6 }
  0x71   : > { %1243 = shalt.err (!%p1240_p5)
}
  0x72   : > { %s1244_s22 = scalar_lea.vmem %s1612_s25, 1024  ;;  %s1383_s14 = smov [#allocation7]  }
  0x73   : > { %p1245_p7 = scmp.ne.s32.totalorder %s1612_s25, %s1244_s22  ;;  %s1249_s12 = sshll.u32 %s1383_s14, 4  ;;  %s1250_s12 = int_to_ptr.vmem [resolvable:$false] %s1249_s12 }
  0x74   : > { %s1251_s7 = scalar_lea.vmem %s1250_s12, 2048  ;;  %p1252_p12 = scmp.lt.s32.totalorder %s1612_s25, %s1250_s12 }
  0x75   : > { %p1247_p0 = pnand %p1245_p7, %p1233_p9  ;;  %p1253_p13 = scmp.lt.s32.totalorder %s1251_s7, %s1244_s22 }
  0x77   : > { %p1248_p11 = pneg %p1247_p0  ;;  %p1254_p3 = por %p1253_p13, %p1252_p12 }
  0x79   : > { %p1255_p2 = pnand %p1254_p3, %p1248_p11 }
  0x7b   : > { %1258 = shalt.err (!%p1255_p2)
}
  0x7c   : > { %s1825_s3 = smov 4   ;;  %s1826_s15 = smov 64  }
  0x7d   : > { %1079 = dma.hbm_to_vmem [thread:$0]  (!%p1600_p1), %s1617_s0, 1024, %s1612_s25, %s1619_s9, %s1826_s15, %s1826_s15, %s1825_s3  }
  0x7e   : > { %p1827_p9 = scmp.ne.s32.totalorder %s1816_s23, 0 }
  0x7f   : > { %s281_s27 = sand.u32 (!%p1827_p9), 1, %s1369_s8   ;;  %p1828_p2 = scmp.ne.s32.totalorder (!%p1827_p9), %s1809_s19, 0 }
  0x80   : > { %279 = sbr.rel (%p1827_p9) target bundleno = 731 (0x2db), region = 40  ;;  %s965_s20 = sshll.u32 (!%p1827_p9), %s281_s27, 6 }
  0x81   : > { %s282_s16 = scalar_lea.sflag (!%p1827_p9), [#allocation5], %s281_s27  ;;  %s1646_s18 = scalar_lea.vmem (!%p1827_p9), [#allocation4], %s965_s20 }
  0x85   : > { %1328 = dma.done.wait (%p1828_p2), %s282_s16, 1024  }
  0x86   : > { %1330 = vsyncadd (%p1828_p2), %s282_s16, 4294966272  ;;  %s290_s17 = sand.u32 1, %s1357_s29   ;;  %p1829_p1 = scmp.ne.s32.totalorder %s1819_s21, 0 }
  0x87   : > { %s966_s22 = sshll.u32 %s290_s17, 6  ;;  %s291_s25 = scalar_lea.sflag [#allocation8], %s290_s17 }
  0x88   : > { %s1653_s0 = scalar_lea.vmem [#allocation7], %s966_s22 }
  0x89   : > { %1332 = dma.done.wait (%p1829_p1), %s291_s25, 1024  }
  0x8a   : > { %1334 = vsyncadd (%p1829_p1), %s291_s25, 4294966272  ;;  %p338_p6 = scmp.lt.s32.totalorder %s1474_s11, 1  ;;  %v356_v0 = vlaneseq  ;;  %v1384_v1 = vmov 0.0   ;;  %v1171_v17 = vld [vmem:[%s1646_s18 + $0x38] sm:$0xff]   ;;  %v1172_v20 = vld [vmem:[%s1646_s18 + $0x30] sm:$0xff]   ;;  %vm1385_vm0 = vmmov 0  }
  0x8b   : > { %1019 = vmatprep.subr.bf16.mxu0 %v1384_v1  ;;  %1039 = vmatprep.subr.bf16.mxu1 %v1384_v1  ;;  %v1173_v24 = vld [vmem:[%s1646_s18 + $0x28] sm:$0xff]   ;;  %v1174_v28 = vld [vmem:[%s1646_s18 + $0x20] sm:$0xff]   ;;  %v1175_v31 = vld [vmem:[%s1646_s18 + $0x18] sm:$0xff]   ;;  %vm694_vm1 = vcmask 64512   ;;  %vm590_vm10 = vcmask 1041409   ;;  %vm592_vm11 = vcmask 1042434  }
  0x8c   : > { %s339_s19 = scalar_select %p338_p6, %s1474_s11, 1  ;;  %v359_v2 = vshrl.u32 %v356_v0, 7  ;;  %1020 = vmatpush3.bf16.msra.mxu0 %v1171_v17  ;;  %v1176_v34 = vld [vmem:[%s1646_s18 + $0x10] sm:$0xff]   ;;  %v1177_v35 = vld [vmem:[%s1646_s18 + $0x8] sm:$0xff]   ;;  %1035 = vmatprep.mubr.msk.bf16.mxu0 %vm1385_vm0, %v1384_v1  ;;  %v1178_v36 = vld [vmem:[%s1646_s18] sm:$0xff]   ;;  %v357_v47 = vand.u32 127, %v356_v0 }
  0x8d   : > { %1021 = vmatprep.subr.bf16.mxu0 %v1384_v1  ;;  %1055 = vmatprep.mubr.msk.bf16.mxu1 %vm1385_vm0, %v1384_v1  ;;  %v1179_v37 = vld [vmem:[%s1653_s0 + $0x38] sm:$0xff]   ;;  %v1180_v38 = vld [vmem:[%s1653_s0 + $0x30] sm:$0xff]   ;;  %v1181_v39 = vld [vmem:[%s1653_s0 + $0x28] sm:$0xff]   ;;  %vm594_vm12 = vcmask 1043459   ;;  %vm596_vm13 = vcmask 1044484   ;;  %vm598_vm14 = vcmask 1045509  }
  0x8e   : > { %s968_s23 = sshll.u32 %s339_s19, 3  ;;  %v374_v3 = vsub.s32 2, %v359_v2  ;;  %v360_v4 = vsub.s32 0, %v359_v2  ;;  %v381_v5 = vsub.s32 3, %v359_v2  ;;  %v367_v6 = vsub.s32 1, %v359_v2  ;;  %1040 = vmatpush3.bf16.msra.mxu1 %v1179_v37  ;;  %v1182_v41 = vld [vmem:[%s1653_s0 + $0x20] sm:$0xff]  }
  0x8f   : > { %s341_s21 = scalar_lea.vmem %s1786_s1, %s968_s23  ;;  %s345_s3 = scalar_lea.vmem %s1787_s2, %s968_s23  ;;  %v388_v8 = vsub.s32 4, %v359_v2  ;;  %v395_v16 = vsub.s32 5, %v359_v2  ;;  %v402_v23 = vsub.s32 6, %v359_v2  ;;  %v409_v27 = vsub.s32 7, %v359_v2  ;;  %1041 = vmatprep.subr.bf16.mxu1 %v1384_v1  ;;  %v1183_v42 = vld [vmem:[%s1653_s0 + $0x18] sm:$0xff]   ;;  %v1184_v43 = vld [vmem:[%s1653_s0 + $0x10] sm:$0xff]  }
  0x90   : > { %v354_v7 = vld [vmem:[%s341_s21] sm:$0xff]  ;;  %1022 = vmatpush3.bf16.msra.mxu0 %v1172_v20  ;;  %v1185_v44 = vld [vmem:[%s1653_s0 + $0x8] sm:$0xff]   ;;  %vm600_vm15 = vcmask 1046534   ;;  %vm602_vm0 = vcmask 1047559   ;;  %s348_s15 = sld [smem:[#allocation3 + %s1474_s11]]  ;;  %s335_s18 = sand.u32 1, %s1345_s26  }
  0x91   : > { %v375_v9 = vrot.slane %v354_v7, %v374_v3  ;;  %v361_v10 = vrot.slane %v354_v7, %v360_v4  ;;  %v1670_v11 = vld [vmem:[%s345_s3] sm:$0xff]  ;;  %v382_v12 = vrot.slane %v354_v7, %v381_v5  ;;  %v368_v13 = vrot.slane %v354_v7, %v367_v6  ;;  %1023 = vmatprep.subr.bf16.mxu0 %v1384_v1  ;;  %s967_s17 = sshll.u32 %s335_s18, 3  ;;  %s996_s22 = sshll.u32 %s1474_s11, 7 }
  0x92   : > { %v448_v14 = vrot.slane %v1670_v11, %v367_v6  ;;  %v441_v15 = vrot.slane %v1670_v11, %v360_v4  ;;  %v455_v18 = vrot.slane %v1670_v11, %v374_v3  ;;  %v389_v19 = vrot.slane %v354_v7, %v388_v8  ;;  %1042 = vmatpush3.bf16.msra.mxu1 %v1180_v38  ;;  %s337_s25 = scalar_lea.vmem [#allocation9], %s967_s17  ;;  %s1731_s9 = scalar_lea.hbm %s1791_s6, %s996_s22 }
  0x93   : > { %377 = vbcast.lane.b32.xlu1 %v375_v9, 256  ;;  %363 = vbcast.lane.b32.xlu0 %v361_v10, 256  ;;  %v462_v21 = vrot.slane %v1670_v11, %v381_v5  ;;  %v396_v22 = vrot.slane %v354_v7, %v395_v16  ;;  %v469_v25 = vrot.slane %v1670_v11, %v388_v8  ;;  %v695_v40 = vsel %vm694_vm1, %v1670_v11, 0.0  ;;  %s816_s14 = scalar_lea.sflag [#allocation6], %s335_s18  ;;  %p1830_p4 = scmp.ne.s32.totalorder %s1812_s24, 0 }
  0x94   : > { %v403_v26 = vrot.slane %v354_v7, %v402_v23  ;;  %1024 = vmatpush3.bf16.msra.mxu0 %v1173_v24  ;;  %v476_v29 = vrot.slane %v1670_v11, %v395_v16  ;;  %v410_v30 = vrot.slane %v354_v7, %v409_v27  ;;  %v490_v32 = vrot.slane %v1670_v11, %v409_v27  ;;  %s1386_s12 = smov [#allocation9]  }
  0x95   : > { %1025 = vmatprep.subr.bf16.mxu0 %v1384_v1  ;;  %v483_v33 = vrot.slane %v1670_v11, %v402_v23  ;;  %1043 = vmatprep.subr.bf16.mxu1 %v1384_v1  ;;  %s1263_s7 = sshll.u32 %s1386_s12, 4  ;;  %s1264_s7 = int_to_ptr.vmem [resolvable:$false] %s1263_s7 }
  0x96   : > { %1044 = vmatpush3.bf16.msra.mxu1 %v1181_v39  ;;  %p349_p8 = scmp.lt.s32.totalorder %s348_s15, 1  ;;  %s1265_s11 = scalar_lea.vmem %s1264_s7, 256 }
  0x97   : > { %384 = vbcast.lane.b32.xlu1 %v382_v12, 256  ;;  %370 = vbcast.lane.b32.xlu0 %v368_v13, 256 }
  0x98   : > { %1026 = vmatpush3.bf16.msra.mxu0 %v1174_v28  ;;  %1045 = vmatprep.subr.bf16.mxu1 %v1384_v1  ;;  %s1858_s15 = smov (!%p349_p8, %s348_s15), 1 }
  0x99   : > { %1027 = vmatprep.subr.bf16.mxu0 %v1384_v1  ;;  %s351_s16 = scalar_lea.vmem %s1790_s5, %s1858_s15 }
  0x9a   : > { %1046 = vmatpush3.bf16.msra.mxu1 %v1182_v41 }
  0x9b   : > { %450 = vbcast.lane.b32.xlu1 %v448_v14, 256  ;;  %443 = vbcast.lane.b32.xlu0 %v441_v15, 256 }
  0x9c   : > { %1028 = vmatpush3.bf16.msra.mxu0 %v1175_v31  ;;  %1047 = vmatprep.subr.bf16.mxu1 %v1384_v1 }
  0x9d   : > { %1029 = vmatprep.subr.bf16.mxu0 %v1384_v1 }
  0x9e   : > { %1048 = vmatpush3.bf16.msra.mxu1 %v1183_v42 }
  0x9f   : > { %457 = vbcast.lane.b32.xlu1 %v455_v18, 256  ;;  %391 = vbcast.lane.b32.xlu0 %v389_v19, 256 }
  0xa0   : > { %1030 = vmatpush3.bf16.msra.mxu0 %v1176_v34  ;;  %1049 = vmatprep.subr.bf16.mxu1 %v1384_v1 }
  0xa1   : > { %1031 = vmatprep.subr.bf16.mxu0 %v1384_v1 }
  0xa2   : > { %1050 = vmatpush3.bf16.msra.mxu1 %v1184_v43 }
  0xa3   : > { %464 = vbcast.lane.b32.xlu1 %v462_v21, 256  ;;  %398 = vbcast.lane.b32.xlu0 %v396_v22, 256 }
  0xa4   : > { %1032 = vmatpush3.bf16.msra.mxu0 %v1177_v35  ;;  %1051 = vmatprep.subr.bf16.mxu1 %v1384_v1 }
  0xa5   : > { %1033 = vmatprep.subr.bf16.mxu0 %v1384_v1 }
  0xa6   : > { %1052 = vmatpush3.bf16.msra.mxu1 %v1185_v44 }
  0xa7   : > { %471 = vbcast.lane.b32.xlu1 %v469_v25, 256  ;;  %405 = vbcast.lane.b32.xlu0 %v403_v26, 256 }
  0xa8   : > { %1034 = vmatpush3.bf16.msra.mxu0 %v1178_v36  ;;  %1053 = vmatprep.subr.bf16.mxu1 %v1384_v1 }
  0xab   : > { %478 = vbcast.lane.b32.xlu1 %v476_v29, 256  ;;  %412 = vbcast.lane.b32.xlu0 %v410_v30, 256 }
  0xaf   : > { %492 = vbcast.lane.b32.xlu1 %v490_v32, 256  ;;  %485 = vbcast.lane.b32.xlu0 %v483_v33, 256 }
  0xce   : > { %696 = vadd.xlane.f32.xlu0 %v695_v40 }
 0x105   : > { %v378_v45 = vpop.permute.xlu1 %377  ;;  %v364_v46 = vpop.permute.xlu0 %363 }
 0x106   : > { %vm414_vm2 = vcmp.eq.s32.totalorder %v364_v46, %v357_v47  ;;  %vm416_vm4 = vcmp.eq.s32.totalorder %v378_v45, %v357_v47 }
 0x107   : > { %v970_v52 = vsel %vm414_vm2, 1.0, %v1384_v1  ;;  %v972_v58 = vsel %vm416_vm4, 1.0, %v1384_v1 }
 0x109   : > { %v385_v48 = vpop.permute.xlu1 %384  ;;  %v371_v49 = vpop.permute.xlu0 %370 }
 0x10a   : > { %vm415_vm3 = vcmp.eq.s32.totalorder %v371_v49, %v357_v47  ;;  %vm417_vm5 = vcmp.eq.s32.totalorder %v385_v48, %v357_v47 }
 0x10b   : > { %v971_v51 = vsel %vm415_vm3, 1.0, %v1384_v1  ;;  %v973_v2 = vsel %vm417_vm5, 1.0, %v1384_v1 }
 0x10d   : > { %v451_v50 = vpop.permute.xlu1 %450  ;;  %v444_v53 = vpop.permute.xlu0 %443 }
 0x10e   : > { %v495_v54 = vmul.f32 %v971_v51, %v451_v50  ;;  %v494_v55 = vmul.f32 %v970_v52, %v444_v53 }
 0x110   : > { %v508_v56 = vrot.slane %v495_v54, 4  ;;  %v502_v57 = vrot.slane %v494_v55, 4 }
 0x111   : > { %v458_v59 = vpop.permute.xlu1 %457  ;;  %v392_v60 = vpop.permute.xlu0 %391 }
 0x112   : > { %v509_v61 = vadd.f32 %v508_v56, %v495_v54  ;;  %v496_v62 = vmul.f32 %v972_v58, %v458_v59  ;;  %v503_v63 = vadd.f32 %v502_v57, %v494_v55  ;;  %vm418_vm6 = vcmp.eq.s32.totalorder %v392_v60, %v357_v47 }
 0x113   : > { %v974_v15 = vsel %vm418_vm6, 1.0, %v1384_v1 }
 0x114   : > { %v514_v0 = vrot.slane %v496_v62, 4  ;;  %v510_v5 = vrot.slane %v509_v61, 2  ;;  %v504_v8 = vrot.slane %v503_v63, 2 }
 0x115   : > { %v465_v3 = vpop.permute.xlu1 %464  ;;  %v399_v4 = vpop.permute.xlu0 %398 }
 0x116   : > { %v515_v6 = vadd.f32 %v514_v0, %v496_v62  ;;  %v497_v7 = vmul.f32 %v973_v2, %v465_v3  ;;  %v511_v13 = vadd.f32 %v510_v5, %v509_v61  ;;  %v505_v16 = vadd.f32 %v504_v8, %v503_v63 }
 0x117   : > { %vm419_vm7 = vcmp.eq.s32.totalorder %v399_v4, %v357_v47 }
 0x118   : > { %v516_v9 = vrot.slane %v515_v6, 2  ;;  %v520_v10 = vrot.slane %v497_v7, 4  ;;  %v512_v23 = vrot.slane %v511_v13, 1  ;;  %v975_v25 = vsel %vm419_vm7, 1.0, %v1384_v1 }
 0x119   : > { %v472_v11 = vpop.permute.xlu1 %471  ;;  %v406_v12 = vpop.permute.xlu0 %405  ;;  %v506_v26 = vrot.slane %v505_v16, 1 }
 0x11a   : > { %v521_v14 = vadd.f32 %v520_v10, %v497_v7  ;;  %v498_v17 = vmul.f32 %v974_v15, %v472_v11  ;;  %v517_v18 = vadd.f32 %v516_v9, %v515_v6  ;;  %vm420_vm8 = vcmp.eq.s32.totalorder %v406_v12, %v357_v47 }
 0x11b   : > { %v976_v30 = vsel %vm420_vm8, 1.0, %v1384_v1  ;;  %v513_v39 = vadd.f32 %v512_v23, %v511_v13  ;;  %v507_v40 = vadd.f32 %v506_v26, %v505_v16  ;;  %v1186_v23 = vld [vmem:[%s1653_s0] sm:$0xff]   ;;  %s829_s0 = sshll.u32 %s337_s25, 4  ;;  %s830_s0 = int_to_ptr.vmem [resolvable:$true] %s829_s0 }
 0x11c   : > { %v522_v19 = vrot.slane %v521_v14, 2  ;;  %v526_v20 = vrot.slane %v498_v17, 4  ;;  %v518_v29 = vrot.slane %v517_v18, 1  ;;  %1054 = vmatpush3.bf16.msra.mxu1 %v1186_v23  ;;  %s1259_s21 = scalar_lea.vmem %s830_s0, 128  ;;  %p1266_p0 = scmp.lt.s32.totalorder %s830_s0, %s1264_s7 }
 0x11d   : > { %v479_v21 = vpop.permute.xlu1 %478  ;;  %v413_v22 = vpop.permute.xlu0 %412  ;;  %v551_v51 = vpack.c.bf16 %v513_v39, %v513_v39  ;;  %v550_v52 = vpack.c.bf16 %v507_v40, %v507_v40  ;;  %p1260_p10 = scmp.ne.s32.totalorder %s830_s0, %s1259_s21  ;;  %p1267_p11 = scmp.lt.s32.totalorder %s1265_s11, %s1259_s21 }
 0x11e   : > { %v523_v24 = vadd.f32 %v522_v19, %v521_v14  ;;  %v527_v27 = vadd.f32 %v526_v20, %v498_v17  ;;  %v499_v28 = vmul.f32 %v975_v25, %v479_v21  ;;  %vm421_vm9 = vcmp.eq.s32.totalorder %v413_v22, %v357_v47 }
 0x11f   : > { %v977_v35 = vsel %vm421_vm9, 1.0, %v1384_v1  ;;  %v519_v43 = vadd.f32 %v518_v29, %v517_v18  ;;  %v583_v62 = vunpack.c.l.b16 %v551_v51  ;;  %v582_v63 = vunpack.c.l.b16 %v550_v52  ;;  %p1261_p5 = pnand %p1260_p10, %p1830_p4  ;;  %p1268_p12 = por %p1267_p11, %p1266_p0 }
 0x120   : > { %v524_v31 = vrot.slane %v523_v24, 1  ;;  %v528_v32 = vrot.slane %v527_v27, 2  ;;  %v532_v33 = vrot.slane %v499_v28, 4 }
 0x121   : > { %v493_v34 = vpop.permute.xlu1 %492  ;;  %v486_v36 = vpop.permute.xlu0 %485  ;;  %v552_v1 = vpack.c.bf16 %v519_v43, %v519_v43  ;;  %v591_v10 = vsel %vm590_vm10, %v583_v62, %v582_v63  ;;  %p1262_p7 = pneg %p1261_p5 }
 0x122   : > { %v501_v37 = vmul.f32 %v977_v35, %v493_v34  ;;  %v500_v38 = vmul.f32 %v976_v30, %v486_v36  ;;  %v529_v41 = vadd.f32 %v528_v32, %v527_v27  ;;  %v533_v42 = vadd.f32 %v532_v33, %v499_v28  ;;  %v986_v33 = vld [vmem:[%s351_s16] ss:$0 sm:$0xff] }
 0x123   : > { %v525_v46 = vadd.f32 %v524_v31, %v523_v24  ;;  %v584_v2 = vunpack.c.l.b16 %v552_v1  ;;  %p1269_p13 = pnand %p1268_p12, %p1262_p7 }
 0x124   : > { %v544_v44 = vrot.slane %v501_v37, 4  ;;  %v538_v45 = vrot.slane %v500_v38, 4  ;;  %v530_v47 = vrot.slane %v529_v41, 1  ;;  %v534_v48 = vrot.slane %v533_v42, 2 }
 0x125   : > { %v553_v57 = vpack.c.bf16 %v525_v46, %v525_v46  ;;  %v593_v12 = vsel %vm592_vm11, %v584_v2, %v591_v10 }
 0x126   : > { %v545_v49 = vadd.f32 %v544_v44, %v501_v37  ;;  %v539_v50 = vadd.f32 %v538_v45, %v500_v38  ;;  %v531_v53 = vadd.f32 %v530_v47, %v529_v41  ;;  %v535_v54 = vadd.f32 %v534_v48, %v533_v42 }
 0x127   : > { %v585_v5 = vunpack.c.l.b16 %v553_v57 }
 0x128   : > { %v546_v55 = vrot.slane %v545_v49, 2  ;;  %v540_v56 = vrot.slane %v539_v50, 2  ;;  %v536_v58 = vrot.slane %v535_v54, 1  ;;  %v554_v59 = vpack.c.bf16 %v531_v53, %v531_v53 }
 0x129   : > { %v595_v15 = vsel %vm594_vm12, %v585_v5, %v593_v12 }
 0x12a   : > { %v547_v60 = vadd.f32 %v546_v55, %v545_v49  ;;  %v541_v61 = vadd.f32 %v540_v56, %v539_v50  ;;  %v537_v0 = vadd.f32 %v536_v58, %v535_v54  ;;  %v586_v7 = vunpack.c.l.b16 %v554_v59 }
 0x12c   : > { %v548_v3 = vrot.slane %v547_v60, 1  ;;  %v542_v4 = vrot.slane %v541_v61, 1  ;;  %v555_v6 = vpack.c.bf16 %v537_v0, %v537_v0  ;;  %v597_v18 = vsel %vm596_vm13, %v586_v7, %v595_v15 }
 0x12e   : > { %v549_v8 = vadd.f32 %v548_v3, %v547_v60  ;;  %v543_v9 = vadd.f32 %v542_v4, %v541_v61  ;;  %v587_v11 = vunpack.c.l.b16 %v555_v6 }
 0x130   : > { %v557_v13 = vpack.c.bf16 %v549_v8, %v549_v8  ;;  %v556_v14 = vpack.c.bf16 %v543_v9, %v543_v9  ;;  %v599_v19 = vsel %vm598_vm14, %v587_v11, %v597_v18 }
 0x132   : > { %v589_v16 = vunpack.c.l.b16 %v557_v13  ;;  %v588_v17 = vunpack.c.l.b16 %v556_v14 }
 0x134   : > { %v601_v20 = vsel %vm600_vm15, %v588_v17, %v599_v19 }
 0x135   : > { %v603_v21 = vsel %vm602_vm0, %v589_v16, %v601_v20 }
 0x136   : > { %v604_v22 = vpack.c.b16 %v603_v21, %v603_v21 }
 0x138   : > { %1036 = vmatmul.mubr.bf16.vlgmr.msra.gmra.mxu0 %v604_v22 }
 0x157   : > { %v697_v24 = vpop.xlane.xlu0 %696 }
 0x158   : > { %v698_v25 = vmax.f32 %v697_v24, 1.0 }
 0x15a   : > { %1187 = vrcp.f32 %v698_v25 }
 0x167   : > { %v1188_v26 = vpop.eup %1187 }
 0x1f8   : > { %v688_v27 = vpop.f32.mrf.mxu0 }
 0x1f9   : > { %v700_v28 = vmul.f32 %v1188_v26, %v688_v27 }
 0x1fa   : > { %v1037_v29 = vpop.f32.mrf.mxu0 }
 0x1fb   : > { %v701_v30 = vpack.c.bf16 %v700_v28, %v700_v28 }
 0x1fc   : > { %v691_v31 = vpop.f32.mrf.mxu0 }
 0x1fd   : > { %1056 = vmatmul.mubr.bf16.vlgmr.msra.gmra.mxu1 %v701_v30 }
 0x1fe   : > { %v1038_v32 = vpop.f32.mrf.mxu0 }
 0x2bd   : > { %v807_v34 = vpop.f32.mrf.mxu1 }
 0x2be   : > { %v808_v35 = vadd.f32 %v986_v33, %v807_v34 }
 0x2bf   : > { %v1057_v36 = vpop.f32.mrf.mxu1 }
 0x2c0   : > { %1189 = vtanh.f32 %v808_v35 }
 0x2c1   : > { %v810_v37 = vpop.f32.mrf.mxu1 }
 0x2c3   : > { %v1058_v38 = vpop.f32.mrf.mxu1 }
 0x2cd   : > { %v1190_v39 = vpop.eup %1189 }
 0x2ce   : > { %814 = vst [vmem:[%s337_s25] sm:$0xff] %v1190_v39 }
 0x2cf   : > { %1272 = shalt.err (!%p1269_p13)
}
 0x2d0   : > { %s1273_s3 = scalar_lea.hbm %s1731_s9, 128  ;;  %s1277_s20 = scalar_lea.hbm %s1791_s6, 256 }
 0x2d1   : > { %p1274_p3 = scmp.ne.s32.totalorder %s1731_s9, %s1273_s3  ;;  %p1278_p1 = scmp.lt.s32.totalorder %s1731_s9, %s1791_s6 }
 0x2d2   : > { %p1279_p6 = scmp.lt.s32.totalorder %s1277_s20, %s1273_s3 }
 0x2d3   : > { %p1275_p9 = pnand %p1274_p3, %p1830_p4 }
 0x2d4   : > { %p1280_p8 = por %p1279_p6, %p1278_p1 }
 0x2d5   : > { %p1276_p2 = pneg %p1275_p9 }
 0x2d7   : > { %p1281_p10 = pnand %p1280_p8, %p1276_p2 }
 0x2d9   : > { %1284 = shalt.err (!%p1281_p10)
}
 0x2da   : > { %1067 = dma.vmem_to_hbm [thread:$0]  (%p1830_p4), %s830_s0, 128, %s1731_s9, %s816_s14  }
 0x2db PF: > { %s1831_s17 = sld [smem:[#allocation18_spill]]  ;;  %p1834_p7 = scmp.ge.s32.totalorder %s1377_s10, 2 }
 0x2dc   : > { %s1832_s22 = sld [smem:[#allocation23_spill]] }
 0x2e1   : > { %s841_s25 = sand.u32 1, %s1831_s17  }
 0x2e2   : > { %p1833_p5 = scmp.ne.s32.totalorder %s1832_s22, 0  ;;  %s842_s19 = scalar_lea.sflag [#allocation6], %s841_s25 }
 0x2e4   : > { %p1081_p0 = pnand %p1834_p7, %p1833_p5 }
 0x2e6   : > { %p1082_p11 = pneg %p1081_p0 }
 0x2e8   : > { %1336 = dma.done.wait (%p1082_p11), %s842_s19, 128  }
 0x2e9   : > { %1338 = vsyncadd (%p1082_p11), %s842_s19, 4294967168  ;;  %s1835_s23 = sld [smem:[#allocation19_spill]]  ;;  %s1837_s24 = smov %s1605_s28 }
 0x2ea   : > { %s1836_s27 = sld [smem:[#allocation21_spill]]  ;;  %p28_p4 = scmp.ge.s32.totalorder %s1478_s13, 4  }
 0x2eb   : > { %s1838_s9 = sld [smem:[#allocation20_spill]]  ;;  %s1840_s0 = smov %s1345_s26 }
 0x2ec   : > { %s1839_s14 = sld [smem:[#allocation22_spill]]  ;;  %s1842_s28 = smov %s1357_s29 }
 0x2ed   : > { %s1843_s29 = smov %s1361_s30  ;;  %s1844_s30 = smov %s1837_s24 }
 0x2ee   : > { %s1845_s7 = smov %s1369_s8  ;;  %s1848_s10 = smov %s1478_s13 }
 0x2ef   : > { %s1841_s26 = smov %s1835_s23  ;;  %30 = sbr.rel (!%p28_p4) target bundleno = 25 (0x19), region = 107 }
 0x2f1   : > { %s1846_s8 = smov %s1838_s9 }
 0x2f2   : > { %s1847_s9 = smov %s1839_s14 }
 0x2f4   :  { %847 = vsyncpa [#allocation5], 1 }
 0x2f5   :  { %849 = vsyncpa [#allocation5 + $0x1], 1 }
 0x2f6   :  { %850 = vsyncpa [#allocation8], 1 }
 0x2f7   :  { %852 = vsyncpa [#allocation8 + $0x1], 1 }
 0x2f8   :  { %853 = vsyncpa [#allocation6], 1 }
 0x2f9   :  { %855 = vsyncpa [#allocation6 + $0x1], 1 }

</bundles_post_ra>
